<compile_context>
chip_gen: v7x
topology: tpu7x:2x2x1
jax: 0.10.0
libtpu: 0.0.40
codegen_flags: <defaults>
</compile_context>

<pallas_src>
import functools

import jax
import jax.numpy as jnp
from jax import lax
from jax.experimental import pallas as pl
from jax.experimental.pallas import tpu as pltpu


def _round_up(x, m):
    return ((x + m - 1) // m) * m


def _vmem_limit_bytes():
    """Per-generation scoped-VMEM budget (v5e/v6e: 128 MiB physical, v7x: 64 MiB)."""
    try:
        cap = int(pltpu.get_tpu_info().vmem_capacity_bytes)
    except Exception:
        cap = 64 * 2 ** 20               # conservative (v7x-sized) fallback
    # leave headroom for Mosaic-internal scratch
    return min(cap - 4 * 2 ** 20, int(cap * 0.9))


# ------------------------------ fused kernel ------------------------------ #
def _fused_tcn_kernel(xcol_ref, w_ref, p_ref, out_ref, *scratch,
                      resident, nl_valid, pad_cols, eps):
    if resident:
        ybuf, sum_sc, sq_sc, scale_sc, shift_sc = scratch
    else:
        sum_sc, sq_sc, scale_sc, shift_sc = scratch

    p = pl.program_id(0)                 # 0: conv + batch stats, 1: BN scale/shift + ReLU
    t = pl.program_id(1)                 # tile index along the flattened (N*L) lane axis

    params = p_ref[...]                  # (C_out, 3): [bias | gamma | beta]
    bias = params[:, 0:1]

    @pl.when((p == 0) & (t == 0))
    def _init_stats():
        sum_sc[...] = jnp.zeros(sum_sc.shape, sum_sc.dtype)
        sq_sc[...] = jnp.zeros(sq_sc.shape, sq_sc.dtype)

    @pl.when(p == 0)
    def _conv_and_stats():
        # Single MXU matmul per tile: (C_out, K*C_in) @ (K*C_in, TL), f32 accumulation.
        y = jnp.dot(w_ref[...], xcol_ref[...],
                    preferred_element_type=jnp.float32) + bias       # (C_out, TL) f32
        # No per-tile validity masking: lane-padding columns of xcol are exact zeros, so the
        # padded columns of y are exactly `bias`; their contribution is removed exactly (in
        # f32) at finalize time. Saves an iota/compare/select per element on every tile.
        sum_sc[...] += y.sum(axis=1, keepdims=True)
        sq_sc[...] += (y * y).sum(axis=1, keepdims=True)
        if resident:
            ybuf[t] = y.astype(ybuf.dtype)           # bf16 residency: halves VMEM + traffic

    @pl.when((p == 1) & (t == 0))
    def _finalize_scale_shift():
        gamma = params[:, 1:2]
        beta = params[:, 2:3]
        s = sum_sc[...] - float(pad_cols) * bias
        sq = sq_sc[...] - float(pad_cols) * (bias * bias)
        count = float(nl_valid)
        mean = s / count
        # biased variance (PyTorch BN normalization); clamp E[y^2]-E[y]^2 cancellation.
        # TODO(synk): Welford-style per-tile combine if inputs are far from zero-centered.
        var = jnp.maximum(sq / count - mean * mean, 0.0)
        scale = gamma * lax.rsqrt(var + eps)
        scale_sc[...] = scale
        shift_sc[...] = beta - mean * scale

    @pl.when(p == 1)
    def _bn_relu():
        if resident:
            y = ybuf[t].astype(jnp.float32)
        else:
            # Recompute path: re-stream the xcol tile and redo the (MXU-nearly-idle) matmul
            # instead of keeping the conv output resident -> no VMEM cap on N*L*C_out.
            y = jnp.dot(w_ref[...], xcol_ref[...],
                        preferred_element_type=jnp.float32) + bias
        out_ref[...] = jnp.maximum(y * scale_sc[...] + shift_sc[...],
                                   0.0).astype(out_ref.dtype)


# -------------------------------- wrapper --------------------------------- #
def tcn_block_forward(x, w, bias, gamma, beta, *, kernel_size=3, dilation=1,
                      eps=1e-5, compute_dtype=jnp.bfloat16, out_dtype=jnp.float32,
                      tile_nl=4096, residency=None):
    """x: (N, C_in, L); w: (C_out, C_in, K); bias/gamma/beta: (C_out,).

    Returns (N, C_out, L) in `out_dtype` (pass bfloat16 to halve HBM write traffic when
    the consumer allows it).
    residency: None -> auto (per-generation VMEM budget), True -> force VMEM-resident conv
    output, False -> force recompute path.
    """
    N, C_in, L = x.shape
    C_out = w.shape[0]
    K = kernel_size
    KC = C_in * K
    pad = dilation * (K - 1) // 2
    NL = N * L

    vmem_limit = _vmem_limit_bytes()
    budget = vmem_limit - 2 * 2 ** 20
    out_itemsize = jnp.dtype(out_dtype).itemsize

    def _tile_fixed_bytes(tl):
        return (2 * KC * tl * 2                      # xcol tile (bf16), double-buffered
                + 2 * C_out * tl * out_itemsize      # out tile, double-buffered
                + 2 * C_out * KC * 2                 # w2 (bf16)
                + 2 * max(C_out, 8) * 128 * 4        # packed params (lane-padded)
                + 4 * max(C_out, 8) * 128 * 4)       # sum/sq/scale/shift scratch

    TL = min(max(tile_nl, 128), _round_up(NL, 128))
    TL = (TL // 128) * 128
    while TL > 128 and _tile_fixed_bytes(TL) > budget // 2:
        TL = max(128, ((TL // 2) // 128) * 128)
    NL_pad = _round_up(NL, TL)
    NT = NL_pad // TL
    pad_cols = NL_pad - NL

    ybuf_bytes = NT * C_out * TL * 2                 # bf16-resident conv output
    if residency is None:
        resident = _tile_fixed_bytes(TL) + ybuf_bytes <= budget
    else:
        resident = bool(residency)
        if resident:
            assert _tile_fixed_bytes(TL) + ybuf_bytes <= budget, (
                "resident conv output does not fit VMEM budget; use residency=False")

    # ---- wrapper glue: build the (K*C_in, N*L) tap slab ------------------ #
    # Only the 1x input `x` is transposed; stacking the K taps and merging (C_in, K) /
    # (N, L) axes are layout-trivial reshapes (the old transpose of the K-duplicated slab
    # is gone).
    # TODO(synk): stream the K taps straight from padded x with pl.Element offset index
    # maps (k*dilation shifts) to drop the tap-slab materialization entirely.
    x_t = jnp.transpose(x, (1, 0, 2)).astype(jnp.float32)            # (C_in, N, L)
    x_t = jnp.pad(x_t, ((0, 0), (0, 0), (pad, pad)))                 # (C_in, N, L+2p)
    taps = jnp.stack([x_t[:, :, k * dilation:k * dilation + L] for k in range(K)],
                     axis=1)                                         # (C_in, K, N, L)
    xcol = taps.reshape(KC, NL)                                      # row = ci*K + k
    xcol = jnp.pad(xcol, ((0, 0), (0, pad_cols))).astype(compute_dtype)

    w2 = w.reshape(C_out, KC).astype(compute_dtype)                  # row order matches xcol
    params = jnp.stack([bias, gamma, beta], axis=1).astype(jnp.float32)   # (C_out, 3)

    scratch_shapes = []
    if resident:
        scratch_shapes.append(pltpu.VMEM((NT, C_out, TL), jnp.bfloat16))  # resident conv out
    scratch_shapes += [
        pltpu.VMEM((C_out, 1), jnp.float32),    # per-channel sum
        pltpu.VMEM((C_out, 1), jnp.float32),    # per-channel sum of squares
        pltpu.VMEM((C_out, 1), jnp.float32),    # BN scale
        pltpu.VMEM((C_out, 1), jnp.float32),    # BN shift
    ]

    if resident:
        # pass 0 streams xcol tiles; pass 1 pins tile 0 (conv output is read from VMEM).
        xcol_map = lambda p, t: (0, (1 - p) * t)
    else:
        # recompute path: both passes stream the xcol tiles.
        xcol_map = lambda p, t: (0, t)

    kernel = functools.partial(_fused_tcn_kernel, resident=resident,
                               nl_valid=NL, pad_cols=pad_cols, eps=eps)

    out2d = pl.pallas_call(
        kernel,
        out_shape=jax.ShapeDtypeStruct((C_out, NL_pad), out_dtype),
        grid_spec=pltpu.PrefetchScalarGridSpec(
            num_scalar_prefetch=0,
            grid=(2, NT),
            in_specs=[
                pl.BlockSpec((KC, TL), xcol_map),
                pl.BlockSpec((C_out, KC), lambda p, t: (0, 0)),
                pl.BlockSpec((C_out, 3), lambda p, t: (0, 0)),
            ],
            # pass 0 never writes the output; pinning its block index to 0 means the output
            # buffer is only written back once it already holds pass-1 data.
            out_specs=pl.BlockSpec((C_out, TL), lambda p, t: (0, p * t)),
            scratch_shapes=scratch_shapes,
        ),
        compiler_params=pltpu.CompilerParams(
            # both grid axes carry state through scratch -> must stay sequential.
            # TODO(synk): on v7x (2 TCs) split the t axis across cores with per-core partial
            # sums + a cross-core combine instead of a single sequential grid.
            dimension_semantics=("arbitrary", "arbitrary"),
            vmem_limit_bytes=int(vmem_limit),
        ),
    )(xcol, w2, params)

    out = out2d[:, :NL].reshape(C_out, N, L)
    return jnp.transpose(out, (1, 0, 2))


# -------------------------- pure-JAX reference ----------------------------- #
def tcn_block_ref(x, w, bias, gamma, beta, *, kernel_size=3, dilation=1, eps=1e-5,
                  compute_dtype=jnp.bfloat16):
    K = kernel_size
    pad = dilation * (K - 1) // 2
    y = lax.conv_general_dilated(
        x.astype(compute_dtype), w.astype(compute_dtype),
        window_strides=(1,), padding=[(pad, pad)], rhs_dilation=(dilation,),
        dimension_numbers=("NCH", "OIH", "NCH"),
        preferred_element_type=jnp.float32)
    y = y + bias[None, :, None]
    mean = y.mean(axis=(0, 2), keepdims=True)
    var = ((y - mean) ** 2).mean(axis=(0, 2), keepdims=True)     # biased, as PyTorch BN
    y = (y - mean) * lax.rsqrt(var + eps)
    y = y * gamma[None, :, None] + beta[None, :, None]
    return jnp.maximum(y, 0.0)


if __name__ == "__main__":
    # Small shapes consistent with the module: batch=2, C_in=4, C_out=8, L=16
    N, C_in, C_out, L = 2, 4, 8, 16
    K, dilation = 3, 1

    key = jax.random.PRNGKey(0)
    kx, kw, kb = jax.random.split(key, 3)
    x = jax.random.normal(kx, (N, C_in, L), dtype=jnp.float32)
    fan_in = C_in * K
    bound = 1.0 / (fan_in ** 0.5)
    w = jax.random.uniform(kw, (C_out, C_in, K), minval=-bound, maxval=bound, dtype=jnp.float32)
    bias = jax.random.uniform(kb, (C_out,), minval=-bound, maxval=bound, dtype=jnp.float32)
    gamma = jnp.ones((C_out,), dtype=jnp.float32)
    beta = jnp.zeros((C_out,), dtype=jnp.float32)

    ref = tcn_block_ref(x, w, bias, gamma, beta, kernel_size=K, dilation=dilation)

    # VMEM-resident (bf16) conv-output path — extra bf16 rounding of the conv result,
    # hence the slightly looser tolerance.
    out_res = tcn_block_forward(x, w, bias, gamma, beta, kernel_size=K,
                                dilation=dilation, residency=True)
    out_res = jax.block_until_ready(out_res)
    assert out_res.shape == (N, C_out, L)
    assert jnp.allclose(out_res, ref, atol=1e-2, rtol=1e-2), "resident path mismatch vs reference"

    # Recompute (no residency) fallback path — f32 conv result straight into BN/ReLU.
    out_rec = tcn_block_forward(x, w, bias, gamma, beta, kernel_size=K,
                                dilation=dilation, residency=False)
    out_rec = jax.block_until_ready(out_rec)
    assert out_rec.shape == (N, C_out, L)
    assert jnp.allclose(out_rec, ref, atol=2e-3, rtol=2e-3), "recompute path mismatch vs reference"

    print("KERNEL_OK")
</pallas_src>

<mosaic_0001>
module attributes {stable_mosaic.version = 11 : i64} {
  func.func @_fused_tcn_kernel(%arg0: i32, %arg1: i32, %arg2: memref<12x128xbf16, #tpu.memory_space<vmem>>, %arg3: memref<8x12xbf16, #tpu.memory_space<vmem>>, %arg4: memref<8x3xf32, #tpu.memory_space<vmem>>, %arg5: memref<8x128xf32, #tpu.memory_space<vmem>>, %arg6: memref<1x8x128xbf16, #tpu.memory_space<vmem>>, %arg7: memref<8x1xf32, #tpu.memory_space<vmem>>, %arg8: memref<8x1xf32, #tpu.memory_space<vmem>>, %arg9: memref<8x1xf32, #tpu.memory_space<vmem>>, %arg10: memref<8x1xf32, #tpu.memory_space<vmem>>) attributes {dimension_semantics = [#tpu.dimension_semantics<arbitrary>, #tpu.dimension_semantics<arbitrary>], iteration_bounds = array<i64: 2, 1>, scalar_prefetch = 0 : i64, scratch_operands = 5 : i64, tpu.core_type = #tpu.core_type<tc>, window_params = [{transform_indices = @transform_0, window_bounds = array<i64: 12, 128>}, {pipeline_mode = #tpu.pipeline_mode<synchronous>, transform_indices = @transform_1, window_bounds = array<i64: 8, 12>}, {pipeline_mode = #tpu.pipeline_mode<synchronous>, transform_indices = @transform_2, window_bounds = array<i64: 8, 3>}, {transform_indices = @transform_3, window_bounds = array<i64: 8, 128>}]} {
    %c0 = arith.constant 0 : index
    %c0_0 = arith.constant 0 : index
    %0 = vector.load %arg4[%c0, %c0_0] : memref<8x3xf32, #tpu.memory_space<vmem>>, vector<8x3xf32>
    %1 = vector.extract_strided_slice %0 {offsets = [0, 0], sizes = [8, 1], strides = [1, 1]} : vector<8x3xf32> to vector<8x1xf32>
    %c0_i32 = arith.constant 0 : i32
    %2 = arith.cmpi eq, %arg0, %c0_i32 : i32
    %c0_i32_1 = arith.constant 0 : i32
    %3 = arith.cmpi eq, %arg1, %c0_i32_1 : i32
    %4 = arith.andi %2, %3 : i1
    %5 = arith.extui %4 : i1 to i32
    %c0_i32_2 = arith.constant 0 : i32
    %6 = arith.cmpi ne, %5, %c0_i32_2 : i32
    scf.if %6 {
      %cst = arith.constant 0.000000e+00 : f32
      %18 = vector.broadcast %cst : f32 to vector<8x1xf32>
      %c0_9 = arith.constant 0 : index
      %c0_10 = arith.constant 0 : index
      %19 = vector.load %arg7[%c0_9, %c0_10] : memref<8x1xf32, #tpu.memory_space<vmem>>, vector<8x1xf32>
      tpu.vector_store %arg7[%c0_9, %c0_10], %18 {strides = array<i32>} : memref<8x1xf32, #tpu.memory_space<vmem>>, vector<8x1xf32>,
      %cst_11 = arith.constant 0.000000e+00 : f32
      %20 = vector.broadcast %cst_11 : f32 to vector<8x1xf32>
      %c0_12 = arith.constant 0 : index
      %c0_13 = arith.constant 0 : index
      %21 = vector.load %arg8[%c0_12, %c0_13] : memref<8x1xf32, #tpu.memory_space<vmem>>, vector<8x1xf32>
      tpu.vector_store %arg8[%c0_12, %c0_13], %20 {strides = array<i32>} : memref<8x1xf32, #tpu.memory_space<vmem>>, vector<8x1xf32>,
    } else {
    }
    %c0_i32_3 = arith.constant 0 : i32
    %7 = arith.cmpi eq, %arg0, %c0_i32_3 : i32
    %8 = arith.extui %7 : i1 to i32
    %c0_i32_4 = arith.constant 0 : i32
    %9 = arith.cmpi ne, %8, %c0_i32_4 : i32
    scf.if %9 {
      %c0_9 = arith.constant 0 : index
      %c0_10 = arith.constant 0 : index
      %18 = vector.load %arg3[%c0_9, %c0_10] : memref<8x12xbf16, #tpu.memory_space<vmem>>, vector<8x12xbf16>
      %c0_11 = arith.constant 0 : index
      %c0_12 = arith.constant 0 : index
      %19 = vector.load %arg2[%c0_11, %c0_12] : memref<12x128xbf16, #tpu.memory_space<vmem>>, vector<12x128xbf16>
      %cst = arith.constant dense<0.000000e+00> : vector<8x128xf32>
      %20 = tpu.matmul %18, %19, %cst {dimension_numbers = #tpu.dot_dimension_numbers<[1], [0], [0], [1], [0, 0, 1, 1], [], []>} : vector<8x12xbf16>, vector<12x128xbf16>, vector<8x128xf32> -> vector<8x128xf32>
      %21 = vector.broadcast %1 : vector<8x1xf32> to vector<8x128xf32>
      %22 = arith.addf %20, %21 : vector<8x128xf32>
      %c0_13 = arith.constant 0 : index
      %c0_14 = arith.constant 0 : index
      %23 = vector.load %arg7[%c0_13, %c0_14] : memref<8x1xf32, #tpu.memory_space<vmem>>, vector<8x1xf32>
      %cst_15 = arith.constant dense<0.000000e+00> : vector<8xf32>
      %24 = vector.multi_reduction <add>, %22, %cst_15 [1] : vector<8x128xf32> to vector<8xf32>
      %25 = vector.shape_cast %24 : vector<8xf32> to vector<8x1xf32>
      %26 = arith.addf %23, %25 : vector<8x1xf32>
      %c0_16 = arith.constant 0 : index
      %c0_17 = arith.constant 0 : index
      %27 = vector.load %arg7[%c0_16, %c0_17] : memref<8x1xf32, #tpu.memory_space<vmem>>, vector<8x1xf32>
      tpu.vector_store %arg7[%c0_16, %c0_17], %26 {strides = array<i32>} : memref<8x1xf32, #tpu.memory_space<vmem>>, vector<8x1xf32>,
      %c0_18 = arith.constant 0 : index
      %c0_19 = arith.constant 0 : index
      %28 = vector.load %arg8[%c0_18, %c0_19] : memref<8x1xf32, #tpu.memory_space<vmem>>, vector<8x1xf32>
      %29 = arith.mulf %22, %22 : vector<8x128xf32>
      %cst_20 = arith.constant dense<0.000000e+00> : vector<8xf32>
      %30 = vector.multi_reduction <add>, %29, %cst_20 [1] : vector<8x128xf32> to vector<8xf32>
      %31 = vector.shape_cast %30 : vector<8xf32> to vector<8x1xf32>
      %32 = arith.addf %28, %31 : vector<8x1xf32>
      %c0_21 = arith.constant 0 : index
      %c0_22 = arith.constant 0 : index
      %33 = vector.load %arg8[%c0_21, %c0_22] : memref<8x1xf32, #tpu.memory_space<vmem>>, vector<8x1xf32>
      tpu.vector_store %arg8[%c0_21, %c0_22], %32 {strides = array<i32>} : memref<8x1xf32, #tpu.memory_space<vmem>>, vector<8x1xf32>,
      %34 = arith.truncf %22 : vector<8x128xf32> to vector<8x128xbf16>
      %35 = arith.index_cast %arg1 : i32 to index
      %c0_23 = arith.constant 0 : index
      %c0_24 = arith.constant 0 : index
      %36 = vector.load %arg6[%35, %c0_23, %c0_24] : memref<1x8x128xbf16, #tpu.memory_space<vmem>>, vector<1x8x128xbf16>
      %37 = vector.shape_cast %36 : vector<1x8x128xbf16> to vector<8x128xbf16>
      %38 = vector.shape_cast %34 : vector<8x128xbf16> to vector<1x8x128xbf16>
      tpu.vector_store %arg6[%35, %c0_23, %c0_24], %38 {strides = array<i32>} : memref<1x8x128xbf16, #tpu.memory_space<vmem>>, vector<1x8x128xbf16>,
    } else {
    }
    %c1_i32 = arith.constant 1 : i32
    %10 = arith.cmpi eq, %arg0, %c1_i32 : i32
    %c0_i32_5 = arith.constant 0 : i32
    %11 = arith.cmpi eq, %arg1, %c0_i32_5 : i32
    %12 = arith.andi %10, %11 : i1
    %13 = arith.extui %12 : i1 to i32
    %c0_i32_6 = arith.constant 0 : i32
    %14 = arith.cmpi ne, %13, %c0_i32_6 : i32
    scf.if %14 {
      %18 = vector.extract_strided_slice %0 {offsets = [0, 1], sizes = [8, 1], strides = [1, 1]} : vector<8x3xf32> to vector<8x1xf32>
      %19 = vector.extract_strided_slice %0 {offsets = [0, 2], sizes = [8, 1], strides = [1, 1]} : vector<8x3xf32> to vector<8x1xf32>
      %c0_9 = arith.constant 0 : index
      %c0_10 = arith.constant 0 : index
      %20 = vector.load %arg7[%c0_9, %c0_10] : memref<8x1xf32, #tpu.memory_space<vmem>>, vector<8x1xf32>
      %cst = arith.constant 9.600000e+01 : f32
      %21 = vector.broadcast %cst : f32 to vector<8x1xf32>
      %22 = arith.mulf %21, %1 : vector<8x1xf32>
      %23 = arith.subf %20, %22 : vector<8x1xf32>
      %c0_11 = arith.constant 0 : index
      %c0_12 = arith.constant 0 : index
      %24 = vector.load %arg8[%c0_11, %c0_12] : memref<8x1xf32, #tpu.memory_space<vmem>>, vector<8x1xf32>
      %25 = arith.mulf %1, %1 : vector<8x1xf32>
      %cst_13 = arith.constant 9.600000e+01 : f32
      %26 = vector.broadcast %cst_13 : f32 to vector<8x1xf32>
      %27 = arith.mulf %26, %25 : vector<8x1xf32>
      %28 = arith.subf %24, %27 : vector<8x1xf32>
      %cst_14 = arith.constant 3.200000e+01 : f32
      %29 = vector.broadcast %cst_14 : f32 to vector<8x1xf32>
      %30 = arith.divf %23, %29 : vector<8x1xf32>
      %cst_15 = arith.constant 3.200000e+01 : f32
      %31 = vector.broadcast %cst_15 : f32 to vector<8x1xf32>
      %32 = arith.divf %28, %31 : vector<8x1xf32>
      %33 = arith.mulf %30, %30 : vector<8x1xf32>
      %34 = arith.subf %32, %33 : vector<8x1xf32>
      %cst_16 = arith.constant 0.000000e+00 : f32
      %35 = vector.broadcast %cst_16 : f32 to vector<8x1xf32>
      %36 = arith.maximumf %34, %35 : vector<8x1xf32>
      %cst_17 = arith.constant 9.99999974E-6 : f32
      %37 = vector.broadcast %cst_17 : f32 to vector<8x1xf32>
      %38 = arith.addf %36, %37 : vector<8x1xf32>
      %39 = math.rsqrt %38 : vector<8x1xf32>
      %40 = arith.mulf %18, %39 : vector<8x1xf32>
      %c0_18 = arith.constant 0 : index
      %c0_19 = arith.constant 0 : index
      %41 = vector.load %arg9[%c0_18, %c0_19] : memref<8x1xf32, #tpu.memory_space<vmem>>, vector<8x1xf32>
      tpu.vector_store %arg9[%c0_18, %c0_19], %40 {strides = array<i32>} : memref<8x1xf32, #tpu.memory_space<vmem>>, vector<8x1xf32>,
      %42 = arith.mulf %30, %40 : vector<8x1xf32>
      %43 = arith.subf %19, %42 : vector<8x1xf32>
      %c0_20 = arith.constant 0 : index
      %c0_21 = arith.constant 0 : index
      %44 = vector.load %arg10[%c0_20, %c0_21] : memref<8x1xf32, #tpu.memory_space<vmem>>, vector<8x1xf32>
      tpu.vector_store %arg10[%c0_20, %c0_21], %43 {strides = array<i32>} : memref<8x1xf32, #tpu.memory_space<vmem>>, vector<8x1xf32>,
    } else {
    }
    %c1_i32_7 = arith.constant 1 : i32
    %15 = arith.cmpi eq, %arg0, %c1_i32_7 : i32
    %16 = arith.extui %15 : i1 to i32
    %c0_i32_8 = arith.constant 0 : i32
    %17 = arith.cmpi ne, %16, %c0_i32_8 : i32
    scf.if %17 {
      %18 = arith.index_cast %arg1 : i32 to index
      %c0_9 = arith.constant 0 : index
      %c0_10 = arith.constant 0 : index
      %19 = vector.load %arg6[%18, %c0_9, %c0_10] : memref<1x8x128xbf16, #tpu.memory_space<vmem>>, vector<1x8x128xbf16>
      %20 = vector.shape_cast %19 : vector<1x8x128xbf16> to vector<8x128xbf16>
      %21 = arith.extf %20 : vector<8x128xbf16> to vector<8x128xf32>
      %c0_11 = arith.constant 0 : index
      %c0_12 = arith.constant 0 : index
      %22 = vector.load %arg9[%c0_11, %c0_12] : memref<8x1xf32, #tpu.memory_space<vmem>>, vector<8x1xf32>
      %23 = vector.broadcast %22 : vector<8x1xf32> to vector<8x128xf32>
      %24 = arith.mulf %21, %23 : vector<8x128xf32>
      %c0_13 = arith.constant 0 : index
      %c0_14 = arith.constant 0 : index
      %25 = vector.load %arg10[%c0_13, %c0_14] : memref<8x1xf32, #tpu.memory_space<vmem>>, vector<8x1xf32>
      %26 = vector.broadcast %25 : vector<8x1xf32> to vector<8x128xf32>
      %27 = arith.addf %24, %26 : vector<8x128xf32>
      %cst = arith.constant 0.000000e+00 : f32
      %28 = vector.broadcast %cst : f32 to vector<8x128xf32>
      %29 = arith.maximumf %27, %28 : vector<8x128xf32>
      %c0_15 = arith.constant 0 : index
      %c0_16 = arith.constant 0 : index
      %30 = vector.load %arg5[%c0_15, %c0_16] : memref<8x128xf32, #tpu.memory_space<vmem>>, vector<8x128xf32>
      tpu.vector_store %arg5[%c0_15, %c0_16], %29 {strides = array<i32>} : memref<8x128xf32, #tpu.memory_space<vmem>>, vector<8x128xf32>,
    } else {
    }
    return
  }
  func.func @transform_0(%arg0: i32, %arg1: i32) -> (i32, i32) {
    %c1_i32 = arith.constant 1 : i32
    %0 = arith.subi %c1_i32, %arg0 : i32
    %1 = arith.muli %0, %arg1 : i32
    %c0_i32 = arith.constant 0 : i32
    %c0_i32_0 = arith.constant 0 : i32
    return %c0_i32, %1 : i32, i32
  }
  func.func @transform_1(%arg0: i32, %arg1: i32) -> (i32, i32) {
    %c0_i32 = arith.constant 0 : i32
    %c0_i32_0 = arith.constant 0 : i32
    %c0_i32_1 = arith.constant 0 : i32
    return %c0_i32, %c0_i32_0 : i32, i32
  }
  func.func @transform_2(%arg0: i32, %arg1: i32) -> (i32, i32) {
    %c0_i32 = arith.constant 0 : i32
    %c0_i32_0 = arith.constant 0 : i32
    %c0_i32_1 = arith.constant 0 : i32
    return %c0_i32, %c0_i32_0 : i32, i32
  }
  func.func @transform_3(%arg0: i32, %arg1: i32) -> (i32, i32) {
    %0 = arith.muli %arg0, %arg1 : i32
    %c0_i32 = arith.constant 0 : i32
    %c0_i32_0 = arith.constant 0 : i32
    return %c0_i32, %0 : i32, i32
  }
}

</mosaic_0001>

<bundles_post_ra>
// kernel: tpu_custom_call.1
= control target key start
LH: loop header
LB: loop body
LE: loop exit
PB: predicated region body
PF: predicated region fallthrough
CT: control target
= control target key end

     0   :  { %8 = vsyncpa [#allocation8], 0  ;;  %s676_s0 = inlined_call_operand.vmem [shape: bf16[12,128], index: 0, kind: input, shape index: {}]   ;;  %s677_s1 = inlined_call_operand.vmem [shape: bf16[8,12], index: 1, kind: input, shape index: {}]   ;;  %s678_s2 = inlined_call_operand.vmem [shape: f32[8,3], index: 2, kind: input, shape index: {}]   ;;  %s679_s3 = inlined_call_operand.hbm [shape: f32[8,128], index: 3, kind: output, shape index: {}]  }
   0x1   :  { %10 = vsyncpa [#allocation8 + $0x1], 0  ;;  %s597_s12 = smov 0   ;;  %s599_s13 = smov 0  }
   0x2   :  { %s601_s14 = smov 0  }
   0x3 LB: > { %s437_s15 = sadd.s32 4294967295, %s565_s14   ;;  %s438_s16 = sadd.s32 4294967294, %s565_s14   ;;  %s565_s14 = sphi %s601_s14, %s16_s14   ;;  %s561_s13 = sphi %s599_s13, %s682_s13   ;;  %s557_s12 = sphi %s597_s12, %s681_s12  }
   0x4   : > { %s28_s17 = sadd.s32 1, %s561_s13  ;;  %p442_p0 = scmp.ge.s32.totalorder %s565_s14, 1 }
   0x5   : > { %p30_p1 = scmp.ge.s32.totalorder %s28_s17, 2  ;;  %p161_p2 = scmp.lt.s32.totalorder %s565_s14, 3 }
   0x7   : > { %s684_s17 = smov (%p30_p1, %s28_s17), 0  ;;  %p162_p3 = pnand %p442_p0, %p161_p2 }
   0x8   : > { %v622_v0 = vld [vmem:[%s678_s2] sm:$0xff] (!%p162_p3)  ;;  %p197_p4 = scmp.eq.s32.totalorder (!%p162_p3), %s557_s12, 0 }
   0x9   : > { %165 = sbr.rel (%p162_p3) target bundleno = 1048 (0x418), region = 32 }
  0x10   : > { %202 = sbr.rel (!%p197_p4) target bundleno = 23 (0x17), region = 36  ;;  %vm203_vm0 = vcmask (%p197_p4), 7168   ;;  %v567_v1 = vmov (%p197_p4), 0.0  }
  0x11   : > { %204 = vst.msk [vmem:[#allocation3] sm:$0xff] (%p197_p4), %vm203_vm0, %v567_v1  ;;  %205 = vst.msk [vmem:[#allocation4] sm:$0xff] (%p197_p4), %vm203_vm0, %v567_v1 }
  0x17 PF: > { %p444_p5 = scmp.ne.s32.totalorder %s557_s12, 0 }
  0x18   : > { %vm226_vm1 = vcmask (!%p444_p5), 1045504   ;;  %v568_v2 = vmov (!%p444_p5), 0.0   ;;  %v509_v3 = vld [vmem:[%s676_s0] sm:$0x3f] (!%p444_p5)   ;;  %vm569_vm2 = vmmov (!%p444_p5), 0   ;;  %v570_v5 = vmov (!%p444_p5), 0  }
  0x19   : > { %208 = sbr.rel (%p444_p5) target bundleno = 390 (0x186), region = 40  ;;  %457 = vmatprep.subr.bf16.mxu0 (!%p444_p5), %v568_v2  ;;  %459 = vmatprep.mubr.msk.bf16.mxu0 (!%p444_p5), %vm569_vm2, %v568_v2  ;;  %v228_v4 = vsel (!%p444_p5), %vm226_vm1, %v509_v3, 0  ;;  %v209_v6 = vld [vmem:[%s677_s1] sm:$0xf] (!%p444_p5)  ;;  %vm222_vm3 = vcmask (!%p444_p5), 97280   ;;  %v270_v15 = vld [vmem:[#allocation3] sm:$0xff] (!%p444_p5) }
  0x1a   : > { %508 = vset.pattern.permute.xlu0 (!%p444_p5), %v570_v5  ;;  %458 = vmatpush3.bf16.msra.mxu0 (!%p444_p5), %v228_v4  ;;  %vm274_vm4 = vcmask (!%p444_p5), 7168   ;;  %v276_v17 = vld [vmem:[#allocation4] sm:$0xff] (!%p444_p5) }
  0x1b   : > { %214 = vperm.xlu0 (!%p444_p5), %508, %v622_v0  }
  0x1d   : > { %460 = vmatmul.mubr.msk.bf16.vlgmr.msra.gmra.mrb[0].mxu0 (!%p444_p5), %vm222_vm3, %v209_v6 }
  0x9a   : > { %v215_v7 = vpop.permute.xlu0 %214 }
  0xf0   : > { %v264_v8 = vpop.f32.mrb[0].mxu0 }
  0xf1   : > { %v265_v9 = vadd.f32 %v264_v8, %v215_v7  ;;  %v461_v10 = vpop.f32.mrb[1].mxu0 }
  0xf2   : > { %v267_v11 = vpop.f32.mrb[2].mxu0 }
  0xf3   : > { %v282_v12 = vpack.c.bf16 %v265_v9, %v265_v9  ;;  %271 = vadd.xlane.f32.xlu0 %v265_v9  ;;  %v462_v13 = vpop.f32.mrb[3].mxu0  ;;  %v277_v14 = vmul.f32 %v265_v9, %v265_v9 }
  0xf5   : > { %285 = vst [vmem:[#allocation2] sm:$0xf] %v282_v12  ;;  %278 = vadd.xlane.f32.xlu1 %v277_v14 }
 0x180   : > { %v272_v16 = vpop.xlane.xlu0 %271 }
 0x181   : > { %v273_v18 = vadd.f32 %v272_v16, %v270_v15 }
 0x182   : > { %v279_v19 = vpop.xlane.xlu1 %278 }
 0x183   : > { %275 = vst.msk [vmem:[#allocation3] sm:$0xff] %vm274_vm4, %v273_v18  ;;  %v280_v20 = vadd.f32 %v279_v19, %v276_v17 }
 0x185   : > { %281 = vst.msk [vmem:[#allocation4] sm:$0xff] %vm274_vm4, %v280_v20 }
 0x186 PF: > { %p286_p6 = scmp.eq.s32.totalorder %s557_s12, 1 }
 0x187   : > { %v292_v22 = vmul.f32 (%p286_p6), 96.0, %v622_v0  ;;  %v295_v23 = vmul.f32 (%p286_p6), %v622_v0, %v622_v0  ;;  %s571_s24 = smov (%p286_p6), 1   ;;  %s572_s25 = smov (%p286_p6), 127   ;;  %vm315_vm5 = vcmask (%p286_p6), 7168  }
 0x188   : > { %290 = sbr.rel (!%p286_p6) target bundleno = 885 (0x375), region = 44  ;;  %s573_s26 = smov (%p286_p6), 2  }
 0x189   : > { %v296_v26 = vmul.f32 (%p286_p6), 96.0, %v295_v23  ;;  %s574_s27 = smov (%p286_p6), 126  }
 0x18a   : > { %v291_v21 = vld [vmem:[#allocation3] sm:$0xff] (%p286_p6) }
 0x18b   : > { %v293_v25 = vsub.f32 (%p286_p6), %v291_v21, %v292_v22 }
 0x18c   : > { %v294_v24 = vld [vmem:[#allocation4] sm:$0xff] (%p286_p6) }
 0x18d   : > { %v297_v27 = vsub.f32 (%p286_p6), %v294_v24, %v296_v26  ;;  %v299_v28 = vmul.f32 (%p286_p6), 0.03125, %v293_v25 }
 0x18f   : > { %v300_v29 = vmul.f32 0.03125, %v297_v27  ;;  %v301_v30 = vmul.f32 %v299_v28, %v299_v28 }
 0x191   : > { %v302_v31 = vsub.f32 %v300_v29, %v301_v30 }
 0x193   : > { %v303_v32 = vmax.f32 %v302_v31, 0.0 }
 0x195   : > { %v304_v33 = vadd.f32 1e-05, %v303_v32 }
 0x197   : > { %510 = vrsqrt.f32 %v304_v33 }
 0x1a1   : > { %v511_v34 = vpop.eup %510 }
 0x1a2   : > { %307 = vrot.lane.b32.xlu0 %v511_v34, %s571_s24 }
 0x214   : > { %v308_v35 = vpop.permute.xlu0 %307 }
 0x215   : > { %v310_v36 = vmul.f32 %v308_v35, %v622_v0 }
 0x217   : > { %312 = vrot.lane.b32.xlu0 %v310_v36, %s572_s25 }
 0x289   : > { %v313_v37 = vpop.permute.xlu0 %312 }
 0x28a   : > { %316 = vst.msk [vmem:[#allocation5] sm:$0xff] %vm315_vm5, %v313_v37  ;;  %v317_v38 = vmul.f32 %v313_v37, %v299_v28 }
 0x28c   : > { %319 = vrot.lane.b32.xlu1 %v317_v38, %s573_s26 }
 0x2fe   : > { %v320_v39 = vpop.permute.xlu1 %319 }
 0x2ff   : > { %v322_v40 = vsub.f32 %v622_v0, %v320_v39 }
 0x301   : > { %324 = vrot.lane.b32.xlu1 %v322_v40, %s574_s27 }
 0x373   : > { %v325_v41 = vpop.permute.xlu1 %324 }
 0x374   : > { %327 = vst.msk [vmem:[#allocation6] sm:$0xff] %vm315_vm5, %v325_v41 }
 0x375 PF: > { %p448_p7 = scmp.ne.s32.totalorder %s557_s12, 1 }
 0x376   : > { %v335_v42 = vld [vmem:[#allocation5] sm:$0xff] (!%p448_p7)  ;;  %v575_v43 = vmov (!%p448_p7), 0   ;;  %v333_v45 = vld [vmem:[#allocation2] sm:$0xf] (!%p448_p7) }
 0x377   : > { %330 = sbr.rel (%p448_p7) target bundleno = 1025 (0x401), region = 48  ;;  %512 = vset.pattern.permute.xlu0 (!%p448_p7), %v575_v43  ;;  %v334_v46 = vunpack.c.l.bf16 (!%p448_p7), %v333_v45 }
 0x378   : > { %338 = vperm.xlu0 (!%p448_p7), %512, %v335_v42  }
 0x37b   : > { %v342_v44 = vld [vmem:[#allocation6] sm:$0xff] (!%p448_p7) }
 0x37c   : > { %345 = vperm.xlu0 (!%p448_p7), %512, %v342_v44  }
 0x3f7   : > { %v339_v47 = vpop.permute.xlu0 %338 }
 0x3f8   : > { %v341_v48 = vmul.f32 %v339_v47, %v334_v46 }
 0x3fb   : > { %v346_v49 = vpop.permute.xlu0 %345 }
 0x3fc   : > { %v348_v50 = vadd.f32 %v346_v49, %v341_v48 }
 0x3fe   : > { %v349_v51 = vmax.f32 %v348_v50, 0.0 }
 0x400   : > { %350 = vst [vmem:[#allocation7] sm:$0xff] %v349_v51 }
 0x401 PF: > { %p642_p8 = scmp.eq.s32.totalorder %s437_s15, 1  ;;  %s576_s29 = smov [#allocation7]  }
 0x402   : > { %s366_s30 = sshll.u32 %s576_s29, 4  ;;  %s367_s30 = int_to_ptr.vmem [resolvable:$true] %s366_s30 }
 0x403   : > { %s513_s4 = scalar_lea.vmem %s367_s30, 128  ;;  %s519_s5 = scalar_lea.vmem %s367_s30, 256 }
 0x404   : > { %p514_p9 = scmp.ne.s32.totalorder %s367_s30, %s513_s4  ;;  %p520_p12 = scmp.lt.s32.totalorder %s367_s30, %s367_s30 }
 0x405   : > { %p521_p13 = scmp.lt.s32.totalorder %s519_s5, %s513_s4 }
 0x406   : > { %p515_p10 = pnand %p514_p9, %p642_p8 }
 0x407   : > { %p522_p0 = por %p521_p13, %p520_p12 }
 0x408   : > { %p516_p11 = pneg %p515_p10 }
 0x40a   : > { %p523_p1 = pnand %p522_p0, %p516_p11 }
 0x40c   : > { %526 = shalt.err (!%p523_p1)
}
 0x40d   : > { %s527_s8 = scalar_lea.hbm %s679_s3, 128 }
 0x40e   : > { %p528_p2 = scmp.ne.s32.totalorder %s679_s3, %s527_s8  ;;  %p533_p5 = scmp.lt.u32.totalorder %s527_s8, %s679_s3 }
 0x410   : > { %p529_p3 = pnand %p528_p2, %p642_p8 }
 0x412   : > { %p530_p4 = pneg %p529_p3 }
 0x414   : > { %p535_p6 = pnand %p533_p5, %p530_p4 }
 0x416   : > { %538 = shalt.err (!%p535_p6)
}
 0x417   : > { %464 = dma.vmem_to_hbm [thread:$0]  (%p642_p8), %s367_s30, 128, %s679_s3, [#allocation8]  }
 0x418 PF: > { %p472_p7 = scmp.ge.s32.totalorder %s565_s14, 2  ;;  %p473_p9 = scmp.eq.s32.totalorder %s438_s16, 1 }
 0x41a   : > { %p468_p10 = pnand %p473_p9, %p472_p7 }
 0x41c   : > { %552 = dma.done.wait (!%p468_p10), [#allocation8], 128  }
 0x41d   : > { %554 = vsyncadd (!%p468_p10), [#allocation8], 4294967168  ;;  %s16_s14 = sadd.s32 1, %s565_s14   ;;  %s681_s12 = smov %s561_s13 }
 0x41e   : > { %p13_p11 = scmp.ge.s32.totalorder %s16_s14, 4   ;;  %s682_s13 = smov %s684_s17 }
 0x420   :  { %15 = sbr.rel (!%p13_p11) target bundleno = 3 (0x3), region = 85 }
 0x427   :  { %384 = vsyncpa [#allocation8], 1 }
 0x428   :  { %386 = vsyncpa [#allocation8 + $0x1], 1 }

</bundles_post_ra>
